<compile_context>
chip_gen: v7x
topology: tpu7x:2x2x1
jax: 0.10.0
libtpu: 0.0.40
codegen_flags: <defaults>
</compile_context>

<pallas_src>
import jax
import jax.numpy as jnp
import numpy as np
from jax.experimental import pallas as pl
from jax.experimental.pallas import tpu as pltpu


_LANE = 128  # TPU vreg lane width (last dim)


def _round_up(n, m):
    return -(-n // m) * m


def _rnn_cell_kernel(xh_ref, w_ref, b_ref, out_ref):
    # Single fused GEMM on the MXU with f32 accumulation; bias add on the
    # VPU; tanh on the EUP (free slot). No operand up-casts.
    preact = jnp.dot(xh_ref[...], w_ref[...], preferred_element_type=jnp.float32)
    out_ref[...] = jnp.tanh(preact + b_ref[...]).astype(out_ref.dtype)


def prepare_rnn_cell_params(W_hx, b_hx, W_hh, b_hh, compute_dtype=None):
    """One-time parameter prep (do NOT call per step).

    W_hx: (hidden, input)   W_hh: (hidden, hidden)   b_*: (hidden,)
    Returns:
      w_fused: (K_pad, H_pad)  = [W_hx^T ; W_hh^T] zero-padded to lane-dense dims
      b_fused: (1, H_pad)      = (b_hx + b_hh) zero-padded, kept in f32
    """
    hidden_size, input_size = W_hx.shape
    assert W_hh.shape == (hidden_size, hidden_size)

    K = input_size + hidden_size
    K_pad = _round_up(K, _LANE)          # lane-dense [x,h] loads
    H_pad = _round_up(hidden_size, _LANE)  # lane-dense output stores

    w_fused = jnp.concatenate([W_hx.T, W_hh.T], axis=0)          # (K, H)
    w_fused = jnp.pad(w_fused, ((0, K_pad - K), (0, H_pad - hidden_size)))
    if compute_dtype is not None:
        w_fused = w_fused.astype(compute_dtype)

    b_fused = (b_hx + b_hh).reshape(1, hidden_size).astype(jnp.float32)
    b_fused = jnp.pad(b_fused, ((0, 0), (0, H_pad - hidden_size)))
    return w_fused, b_fused


def rnn_cell_forward(x, h, w_fused, b_fused, hidden_size):
    """Pallas RNN cell step.

    x: (B, input_size), h: (B, hidden_size)
    w_fused, b_fused: from prepare_rnn_cell_params (called once)
    returns (hidden, hidden) with hidden: (B, hidden_size)
    """
    B, input_size = x.shape
    assert h.shape[0] == B and h.shape[1] == hidden_size
    K = input_size + hidden_size
    K_pad, H_pad = w_fused.shape

    # Pad batch to sublane granularity so the MXU / vregs aren't mostly padding.
    sublane = 8 if jnp.dtype(x.dtype).itemsize >= 4 else 16
    B_pad = _round_up(B, sublane)

    xh = jnp.concatenate([x, h.astype(x.dtype)], axis=1)          # (B, K)
    xh = jnp.pad(xh, ((0, B_pad - B), (0, K_pad - K)))            # (B_pad, K_pad)

    out_padded = pl.pallas_call(
        _rnn_cell_kernel,
        out_shape=jax.ShapeDtypeStruct((B_pad, H_pad), x.dtype),
        in_specs=[
            pl.BlockSpec(memory_space=pltpu.MemorySpace.VMEM),   # [x, h]
            pl.BlockSpec(memory_space=pltpu.MemorySpace.VMEM),   # fused weight
            pl.BlockSpec(memory_space=pltpu.MemorySpace.VMEM),   # fused bias
        ],
        out_specs=pl.BlockSpec(memory_space=pltpu.MemorySpace.VMEM),
    )(xh, w_fused, b_fused)

    hidden = out_padded[:B, :hidden_size]
    return hidden, hidden


def _xavier_uniform(key, shape, dtype=jnp.float32):
    # nn.init.xavier_uniform_ for a (fan_out, fan_in) Linear weight.
    fan_out, fan_in = shape
    bound = float(np.sqrt(6.0 / (fan_in + fan_out)))
    return jax.random.uniform(key, shape, dtype, minval=-bound, maxval=bound)


def _linear_bias_init(key, fan_in, size, dtype=jnp.float32):
    # PyTorch nn.Linear default bias init: U(-1/sqrt(fan_in), 1/sqrt(fan_in)).
    bound = 1.0 / float(np.sqrt(fan_in))
    return jax.random.uniform(key, (size,), dtype, minval=-bound, maxval=bound)


if __name__ == "__main__":
    batch = 2
    input_size = 16
    hidden_size = 32

    key = jax.random.PRNGKey(0)
    k_x, k_h, k_wx, k_bx, k_wh, k_bh = jax.random.split(key, 6)

    # Deterministic parameter init mirroring RNNCell.reset_parameters
    # ('hx': xavier, 'hh': xavier, bias: default nn.Linear bias init).
    W_hx = _xavier_uniform(k_wx, (hidden_size, input_size))
    b_hx = _linear_bias_init(k_bx, input_size, hidden_size)
    W_hh = _xavier_uniform(k_wh, (hidden_size, hidden_size))
    b_hh = _linear_bias_init(k_bh, hidden_size, hidden_size)

    x = jax.random.normal(k_x, (batch, input_size), jnp.float32)
    h = jax.random.normal(k_h, (batch, hidden_size), jnp.float32)

    # Parameter prep happens ONCE (fuse + transpose + pad), not per step.
    w_fused, b_fused = prepare_rnn_cell_params(W_hx, b_hx, W_hh, b_hh)

    hidden, out = rnn_cell_forward(x, h, w_fused, b_fused, hidden_size)
    jax.block_until_ready(hidden)

    # Pure-JAX reference check of the module semantics.
    ref = jnp.tanh(x @ W_hx.T + b_hx + h @ W_hh.T + b_hh)
    np.testing.assert_allclose(np.asarray(hidden), np.asarray(ref),
                               rtol=1e-5, atol=1e-5)
    assert hidden.shape == (batch, hidden_size)
    assert bool(jnp.all(out == hidden))

    print("KERNEL_OK")
</pallas_src>

<mosaic_0001>
module attributes {stable_mosaic.version = 11 : i64} {
  func.func @_rnn_cell_kernel(%arg0: memref<8x128xf32, #tpu.memory_space<vmem>>, %arg1: memref<128x128xf32, #tpu.memory_space<vmem>>, %arg2: memref<1x128xf32, #tpu.memory_space<vmem>>, %arg3: memref<8x128xf32, #tpu.memory_space<vmem>>) attributes {dimension_semantics = [], scalar_prefetch = 0 : i64, scratch_operands = 0 : i64, tpu.core_type = #tpu.core_type<tc>} {
    %c0 = arith.constant 0 : index
    %c0_0 = arith.constant 0 : index
    %0 = vector.load %arg0[%c0, %c0_0] : memref<8x128xf32, #tpu.memory_space<vmem>>, vector<8x128xf32>
    %c0_1 = arith.constant 0 : index
    %c0_2 = arith.constant 0 : index
    %1 = vector.load %arg1[%c0_1, %c0_2] : memref<128x128xf32, #tpu.memory_space<vmem>>, vector<128x128xf32>
    %cst = arith.constant dense<0.000000e+00> : vector<8x128xf32>
    %2 = tpu.matmul %0, %1, %cst {dimension_numbers = #tpu.dot_dimension_numbers<[1], [0], [0], [1], [0, 0, 1, 1], [], []>} : vector<8x128xf32>, vector<128x128xf32>, vector<8x128xf32> -> vector<8x128xf32>
    %c0_3 = arith.constant 0 : index
    %c0_4 = arith.constant 0 : index
    %3 = vector.load %arg2[%c0_3, %c0_4] : memref<1x128xf32, #tpu.memory_space<vmem>>, vector<1x128xf32>
    %4 = vector.broadcast %3 : vector<1x128xf32> to vector<8x128xf32>
    %5 = arith.addf %2, %4 : vector<8x128xf32>
    %6 = math.tanh %5 : vector<8x128xf32>
    %c0_5 = arith.constant 0 : index
    %c0_6 = arith.constant 0 : index
    %7 = vector.load %arg3[%c0_5, %c0_6] : memref<8x128xf32, #tpu.memory_space<vmem>>, vector<8x128xf32>
    tpu.vector_store %arg3[%c0_5, %c0_6], %6 {strides = array<i32>} : memref<8x128xf32, #tpu.memory_space<vmem>>, vector<8x128xf32>,
    return
  }
}

</mosaic_0001>

<bundles_post_ra>
// kernel: tpu_custom_call.1
= control target key start
LH: loop header
LB: loop body
LE: loop exit
PB: predicated region body
PF: predicated region fallthrough
CT: control target
= control target key end

     0   :  { %8 = vsyncpa [#allocation3], 0  ;;  %s386_s0 = inlined_call_operand.hbm [shape: f32[8,128], index: 0, kind: input, shape index: {}]   ;;  %s387_s1 = inlined_call_operand.hbm [shape: f32[128,128], index: 1, kind: input, shape index: {}]   ;;  %s388_s2 = inlined_call_operand.vmem [shape: f32[1,128], index: 2, kind: input, shape index: {}]   ;;  %s389_s3 = inlined_call_operand.hbm [shape: f32[8,128], index: 3, kind: output, shape index: {}]  }
   0x1   :  { %9 = vsyncpa [#allocation6], 0 }
   0x2   :  { %10 = vsyncpa [#allocation4], 0  ;;  %s312_s12 = smov [#allocation2]   ;;  %s313_s14 = smov [#allocation5]  }
   0x3   :  { %s17_s13 = sshll.u32 %s312_s12, 4  ;;  %s26_s15 = sshll.u32 %s313_s14, 4  ;;  %s18_s13 = int_to_ptr.vmem [resolvable:$true] %s17_s13  ;;  %s340_s15 = int_to_ptr.vmem [resolvable:$true] %s26_s15 }
   0x4   :  { %s240_s18 = scalar_lea.hbm %s386_s0, 128 }
   0x5   :  { %p241_p0 = scmp.ne.s32.totalorder %s386_s0, %s240_s18  ;;  %p244_p1 = scmp.lt.u32.totalorder %s240_s18, %s386_s0 }
   0x7   :  { %p246_p2 = pnand %p244_p1, %p241_p0 }
   0x9   :  { %249 = shalt.err (!%p246_p2)
}
   0xa   :  { %s250_s23 = scalar_lea.vmem %s18_s13, 128  ;;  %p255_p4 = scmp.lt.s32.totalorder %s18_s13, %s18_s13 }
   0xb   :  { %p251_p3 = scmp.ne.s32.totalorder %s18_s13, %s250_s23  ;;  %p256_p5 = scmp.lt.s32.totalorder %s250_s23, %s250_s23 }
   0xd   :  { %p257_p6 = por %p256_p5, %p255_p4 }
   0xf   :  { %p258_p7 = pnand %p257_p6, %p251_p3 }
  0x11   :  { %261 = shalt.err (!%p258_p7)
}
  0x12   :  { %20 = dma.hbm_to_vmem [thread:$0]  %s386_s0, 128, %s18_s13, [#allocation3]  }
  0x13   :  { %s262_s28 = scalar_lea.hbm %s387_s1, 2048 }
  0x14   :  { %p263_p8 = scmp.ne.s32.totalorder %s387_s1, %s262_s28  ;;  %p266_p9 = scmp.lt.u32.totalorder %s262_s28, %s387_s1 }
  0x16   :  { %p268_p10 = pnand %p266_p9, %p263_p8 }
  0x18   :  { %271 = shalt.err (!%p268_p10)
}
  0x19   :  { %s272_s6 = scalar_lea.vmem %s340_s15, 2048  ;;  %p277_p12 = scmp.lt.s32.totalorder %s340_s15, %s340_s15 }
  0x1a   :  { %p273_p11 = scmp.ne.s32.totalorder %s340_s15, %s272_s6  ;;  %p278_p13 = scmp.lt.s32.totalorder %s272_s6, %s272_s6 }
  0x1c   :  { %p279_p0 = por %p278_p13, %p277_p12 }
  0x1e   :  { %p280_p1 = pnand %p279_p0, %p273_p11 }
  0x20   :  { %283 = shalt.err (!%p280_p1)
}
  0x21   :  { %s314_s0 = smov 128   ;;  %s315_s7 = smov 8  }
  0x22   :  { %32 = dma.hbm_to_vmem [thread:$0]  %s387_s1, 2048, %s340_s15, [#allocation6], %s314_s0, %s314_s0, %s315_s7  }
  0x23   :  { %306 = dma.done.wait [#allocation3], 128  }
  0x24   :  { %307 = vsyncadd [#allocation3], 4294967168 }
  0x25   :  { %308 = dma.done.wait [#allocation6], 2048  }
  0x26   :  { %309 = vsyncadd [#allocation6], 4294965248  ;;  %v316_v0 = vmov 0.0|0.0   ;;  %vm317_vm0 = vmmov 0   ;;  %v318_v1 = vmov 0.0   ;;  %v42_v2 = vld [vmem:[#allocation5] sm:$0xff] }
  0x27   :  { %206 = vmatprep.subr.bf16.mxu0 %v316_v0  ;;  %203 = vmatprep.mubr.msk.f32.mxu0 %vm317_vm0, %v318_v1  ;;  %v43_v3 = vld [vmem:[#allocation5 + $0x8] sm:$0xff]  ;;  %v44_v4 = vld [vmem:[#allocation5 + $0x10] sm:$0xff]  ;;  %v45_v6 = vld [vmem:[#allocation5 + $0x18] sm:$0xff]  ;;  %s319_s11 = smov [#allocation7]  }
  0x28   :  { %v207_v5 = vpack.c.bf16 %v43_v3, %v42_v2  ;;  %v210_v7 = vpack.c.bf16 %v45_v6, %v44_v4  ;;  %v46_v8 = vld [vmem:[#allocation5 + $0x20] sm:$0xff]  ;;  %v47_v9 = vld [vmem:[#allocation5 + $0x28] sm:$0xff]  ;;  %v48_v11 = vld [vmem:[#allocation5 + $0x30] sm:$0xff]  ;;  %s143_s12 = sshll.u32 %s319_s11, 4  ;;  %s144_s12 = int_to_ptr.vmem [resolvable:$true] %s143_s12 }
  0x29   :  { %v213_v10 = vpack.c.bf16 %v47_v9, %v46_v8  ;;  %v49_v12 = vld [vmem:[#allocation5 + $0x38] sm:$0xff]  ;;  %v50_v14 = vld [vmem:[#allocation5 + $0x40] sm:$0xff]  ;;  %v51_v15 = vld [vmem:[#allocation5 + $0x48] sm:$0xff]  ;;  %s284_s13 = scalar_lea.vmem %s144_s12, 128  ;;  %p289_p3 = scmp.lt.s32.totalorder %s144_s12, %s144_s12 }
  0x2a   :  { %208 = vmatpush3.bf16.msra.mxu0 %v207_v5  ;;  %v216_v13 = vpack.c.bf16 %v49_v12, %v48_v11  ;;  %v219_v16 = vpack.c.bf16 %v51_v15, %v50_v14  ;;  %v52_v17 = vld [vmem:[#allocation5 + $0x50] sm:$0xff]  ;;  %v53_v18 = vld [vmem:[#allocation5 + $0x58] sm:$0xff]  ;;  %v54_v20 = vld [vmem:[#allocation5 + $0x60] sm:$0xff]  ;;  %p285_p2 = scmp.ne.s32.totalorder %s144_s12, %s284_s13  ;;  %p290_p4 = scmp.lt.s32.totalorder %s284_s13, %s284_s13 }
  0x2b   :  { %209 = vmatprep.subr.bf16.mxu0 %v316_v0  ;;  %v222_v19 = vpack.c.bf16 %v53_v18, %v52_v17  ;;  %v55_v21 = vld [vmem:[#allocation5 + $0x68] sm:$0xff]  ;;  %v56_v23 = vld [vmem:[#allocation5 + $0x70] sm:$0xff]  ;;  %v57_v24 = vld [vmem:[#allocation5 + $0x78] sm:$0xff] }
  0x2c   :  { %v225_v22 = vpack.c.bf16 %v55_v21, %v54_v20  ;;  %v228_v25 = vpack.c.bf16 %v57_v24, %v56_v23  ;;  %v41_v26 = vld [vmem:[#allocation2] sm:$0xff]  ;;  %p291_p5 = por %p290_p4, %p289_p3 }
  0x2d   :  { %v153_v27 = vld [vmem:[%s388_s2] ss:$0 sm:$0xff] }
  0x2e   :  { %211 = vmatpush3.bf16.msra.mxu0 %v210_v7  ;;  %p292_p6 = pnand %p291_p5, %p285_p2 }
  0x2f   :  { %212 = vmatprep.subr.bf16.mxu0 %v316_v0 }
  0x32   :  { %214 = vmatpush3.bf16.msra.mxu0 %v213_v10 }
  0x33   :  { %215 = vmatprep.subr.bf16.mxu0 %v316_v0 }
  0x36   :  { %217 = vmatpush3.bf16.msra.mxu0 %v216_v13 }
  0x37   :  { %218 = vmatprep.subr.bf16.mxu0 %v316_v0 }
  0x3a   :  { %220 = vmatpush3.bf16.msra.mxu0 %v219_v16 }
  0x3b   :  { %221 = vmatprep.subr.bf16.mxu0 %v316_v0 }
  0x3e   :  { %223 = vmatpush3.bf16.msra.mxu0 %v222_v19 }
  0x3f   :  { %224 = vmatprep.subr.bf16.mxu0 %v316_v0 }
  0x42   :  { %226 = vmatpush3.bf16.msra.mxu0 %v225_v22 }
  0x43   :  { %227 = vmatprep.subr.bf16.mxu0 %v316_v0 }
  0x46   :  { %229 = vmatpush3.bf16.msra.mxu0 %v228_v25 }
  0x49   :  { %204 = vmatmul.mubr.f32.vlgmr.msra.gmra.mrb[0].mxu0 %v41_v26 }
 0x11c   :  { %v131_v28 = vpop.f32.mrb[0].mxu0 }
 0x11d   :  { %v132_v29 = vadd.f32 %v153_v27, %v131_v28  ;;  %v205_v30 = vpop.f32.mrb[1].mxu0 }
 0x11f   :  { %238 = vtanh.f32 %v132_v29 }
 0x129   :  { %v239_v31 = vpop.eup %238 }
 0x12a   :  { %136 = vst [vmem:[#allocation7] sm:$0xff] %v239_v31 }
 0x12b   :  { %295 = shalt.err (!%p292_p6)
}
 0x12c   :  { %s296_s2 = scalar_lea.hbm %s389_s3, 128 }
 0x12d   :  { %p297_p7 = scmp.ne.s32.totalorder %s389_s3, %s296_s2  ;;  %p300_p8 = scmp.lt.u32.totalorder %s296_s2, %s389_s3 }
 0x12f   :  { %p302_p9 = pnand %p300_p8, %p297_p7 }
 0x131   :  { %305 = shalt.err (!%p302_p9)
}
 0x132   :  { %146 = dma.vmem_to_hbm [thread:$0]  %s144_s12, 128, %s389_s3, [#allocation4]  }
 0x133   :  { %310 = dma.done.wait [#allocation4], 128  }
 0x134   :  { %311 = vsyncadd [#allocation4], 4294967168 }
 0x135   :  { %150 = vsyncpa [#allocation3], 1 }
 0x136   :  { %151 = vsyncpa [#allocation6], 1 }
 0x137   :  { %152 = vsyncpa [#allocation4], 1 }

</bundles_post_ra>
